<compile_context>
chip_gen: v7x
topology: tpu7x:2x2x1
jax: 0.10.0
libtpu: 0.0.40
codegen_flags: <defaults>
</compile_context>

<pallas_src>
import math

import jax
import jax.numpy as jnp
from jax.experimental import pallas as pl
from jax.experimental.pallas import tpu as pltpu

_LANE = 128
_SUBLANE = 8


def _round_up(x, m):
    return (x + m - 1) // m * m


def _cdiv(a, b):
    return (a + b - 1) // b


def _make_actor_kernel(n_trunk_layers, act_dim):
    """n_trunk Linear layers (ReLU between them only) + packed (mean‖logstd) head."""

    def kernel(*refs):
        # refs: obs [TB, obs_dim], (W_i, b_i) * n_trunk, W_head, b_head, out [TB, head_pad]
        x = refs[0][...]
        idx = 1
        for i in range(n_trunk_layers):
            w = refs[idx][...]
            b = refs[idx + 1][...]
            idx += 2
            x = jnp.dot(x.astype(w.dtype), w,
                        preferred_element_type=jnp.float32) + b
            if i < n_trunk_layers - 1:          # ReLU between trunk layers only
                x = jnp.maximum(x, 0.0)

        w_head = refs[idx][...]
        b_head = refs[idx + 1][...]
        out_ref = refs[idx + 2]

        head = jnp.dot(x.astype(w_head.dtype), w_head,
                       preferred_element_type=jnp.float32) + b_head
        # Lanes [0, act_dim) = mean; lanes [act_dim, 2*act_dim) = logstd.
        # std = exp(logstd).  exp runs on the EUP (its own VLIW slot) so doing
        # it on all padded lanes is free; the where-select keeps the store a
        # single unmasked, lane-dense write.
        lane = jax.lax.broadcasted_iota(jnp.int32, head.shape, 1)
        out_ref[...] = jnp.where(lane < act_dim, head, jnp.exp(head))

    return kernel


def gaussian_actor_forward(obs, trunk_params, mean_params, logstd_params, *,
                           block_batch=512, param_dtype=jnp.bfloat16,
                           min_grid_steps=2):
    """Fused GaussianActor forward on TPU via Pallas.

    obs:            [B, obs_dim] (f32 or bf16; dtype is preserved for the DMA)
    trunk_params:   list of (W [in, out], b [out] or [1, out]) trunk layers
    mean_params:    (W [h, act_dim], b [act_dim])
    logstd_params:  (W [h, act_dim], b [act_dim])
    param_dtype:    matmul-input dtype for weights (bf16 default for v6e/v7x
                    MXU; pass jnp.float32 for full-precision).  Accumulation,
                    biases, ReLU and exp always stay in float32.
    returns:        (mean [B, act_dim], std [B, act_dim])
    """
    obs = jnp.asarray(obs)
    B, obs_dim = obs.shape
    act_dim = mean_params[0].shape[1]
    n_trunk = len(trunk_params)

    # Hidden dims padded to 128 lanes; mean‖logstd packed into one slab.
    # NOTE: for large MXU-bound trunks on v6e/v7x prefer model hidden sizes
    # that are multiples of 256 (2x256x256 MXU) — padding here cannot fix that.
    hid = [w.shape[1] for w, _ in trunk_params]
    hid_pad = [_round_up(d, _LANE) for d in hid]
    head_pad = _round_up(2 * act_dim, _LANE)

    def pad_w(w, rows, cols, dtype):
        w = jnp.asarray(w, jnp.float32)
        return jnp.pad(w, ((0, rows - w.shape[0]), (0, cols - w.shape[1]))).astype(dtype)

    def pad_b(b, cols):
        b = jnp.asarray(b, jnp.float32).reshape(1, -1)
        return jnp.pad(b, ((0, 0), (0, cols - b.shape[1])))        # biases stay f32

    flat_params = []
    in_rows = obs_dim                       # K of the first matmul stays un-padded
    for i, (w, b) in enumerate(trunk_params):
        flat_params.append(pad_w(w, in_rows, hid_pad[i], param_dtype))
        flat_params.append(pad_b(b, hid_pad[i]))
        in_rows = hid_pad[i]

    # Fused, packed head: columns [0, act_dim) = mean, [act_dim, 2*act_dim) = logstd.
    wm = jnp.asarray(mean_params[0], jnp.float32)
    wl = jnp.asarray(logstd_params[0], jnp.float32)
    bm = jnp.asarray(mean_params[1], jnp.float32).reshape(-1)
    bl = jnp.asarray(logstd_params[1], jnp.float32).reshape(-1)
    w_head = jnp.zeros((in_rows, head_pad), jnp.float32)
    w_head = w_head.at[:wm.shape[0], :act_dim].set(wm)
    w_head = w_head.at[:wl.shape[0], act_dim:2 * act_dim].set(wl)
    b_head = jnp.zeros((1, head_pad), jnp.float32)
    b_head = b_head.at[0, :act_dim].set(bm)
    b_head = b_head.at[0, act_dim:2 * act_dim].set(bl)
    flat_params += [w_head.astype(param_dtype), b_head]

    # Batch tiling: ~block_batch rows per step, >= min_grid_steps steps when
    # the batch allows it (keeps both v7x TensorCores busy), TB a multiple of
    # 8, so batch padding wastes at most a few rows (never a full block).
    B8 = _round_up(max(B, 1), _SUBLANE)
    n_steps = max(_cdiv(B8, block_batch), min_grid_steps, 1)
    n_steps = max(1, min(n_steps, B8 // _SUBLANE))
    TB = _round_up(_cdiv(B8, n_steps), _SUBLANE)
    B_pad = n_steps * TB
    obs_p = obs if B_pad == B else jnp.pad(obs, ((0, B_pad - B), (0, 0)))

    # Explicit VMEM budget (v5e scoped default is only 16 MiB, v7x physical 64 MiB).
    def nbytes(a):
        return a.size * a.dtype.itemsize

    weight_bytes = sum(nbytes(p) for p in flat_params)
    stream_bytes = 2 * TB * (obs_dim * obs_p.dtype.itemsize + head_pad * 4)
    act_bytes = 2 * TB * 4 * (sum(hid_pad) + head_pad)
    vmem_need = 2 * weight_bytes + stream_bytes + act_bytes + (4 << 20)
    vmem_limit = int(min(100 << 20, max(vmem_need, 16 << 20)))

    # Advisory cost estimate.
    flops, k = 0, obs_dim
    for d in hid_pad:
        flops += 2 * B_pad * k * d
        k = d
    flops += 2 * B_pad * k * head_pad
    cost = pl.CostEstimate(
        flops=int(flops),
        transcendentals=int(B_pad * head_pad),
        bytes_accessed=int(nbytes(obs_p) + weight_bytes + B_pad * head_pad * 4))

    kernel = _make_actor_kernel(n_trunk, act_dim)

    def call(single_buffer_weights):
        def resident_spec(shape):
            if single_buffer_weights:
                # Grid-invariant weights/biases: single-buffer so they don't
                # take 2x VMEM.
                return pl.BlockSpec(shape, lambda i: (0, 0),
                                    pipeline_mode=pl.Buffered(1))
            return pl.BlockSpec(shape, lambda i: (0, 0))

        in_specs = [pl.BlockSpec((TB, obs_dim), lambda i: (i, 0))]
        in_specs += [resident_spec(p.shape) for p in flat_params]
        out_spec = pl.BlockSpec((TB, head_pad), lambda i: (i, 0))

        return pl.pallas_call(
            kernel,
            out_shape=jax.ShapeDtypeStruct((B_pad, head_pad), jnp.float32),
            grid=(n_steps,),
            in_specs=in_specs,
            out_specs=out_spec,
            compiler_params=pltpu.CompilerParams(
                dimension_semantics=("parallel",),
                vmem_limit_bytes=vmem_limit),
            cost_estimate=cost,
        )(obs_p, *flat_params)

    try:
        out = jax.block_until_ready(call(single_buffer_weights=True))
    except Exception:   # pragma: no cover — fall back if Buffered(1) unsupported
        out = call(single_buffer_weights=False)

    mean = out[:B, :act_dim]
    std = out[:B, act_dim:2 * act_dim]
    return mean, std


def _init_linear(key, in_dim, out_dim):
    """PyTorch-style Linear init, weight already transposed to [in, out]."""
    kw, kb = jax.random.split(key)
    bound = 1.0 / math.sqrt(in_dim)
    w = jax.random.uniform(kw, (in_dim, out_dim), jnp.float32, -bound, bound)
    b = jax.random.uniform(kb, (1, out_dim), jnp.float32, -bound, bound)
    return w, b


def _reference_forward(obs, trunk_params, mean_params, logstd_params):
    """Pure-JAX reference (full f32 matmul precision)."""
    hi = jax.lax.Precision.HIGHEST
    x = obs
    n = len(trunk_params)
    for i, (w, b) in enumerate(trunk_params):
        x = jnp.dot(x, w, precision=hi) + b
        if i < n - 1:
            x = jnp.maximum(x, 0.0)
    mean = jnp.dot(x, mean_params[0], precision=hi) + mean_params[1]
    std = jnp.exp(jnp.dot(x, logstd_params[0], precision=hi) + logstd_params[1])
    return mean, std


if __name__ == "__main__":
    # Small shapes consistent with the module.
    obs_dim = 16
    act_dim = 8
    hidden_dims = (32, 32)
    batch = 24          # exercises a 2-step batch grid + row padding

    key = jax.random.PRNGKey(0)
    keys = jax.random.split(key, len(hidden_dims) + 3)

    # GaussianActor trunk = MLP(obs_dim, hidden_dims[-1], hidden_dims[:-1]):
    #   Linear(obs, h0) + ReLU + ... + Linear(h_{n-2}, h_{n-1})   (no ReLU last)
    dims = (obs_dim,) + tuple(hidden_dims)
    trunk_params = [_init_linear(keys[i], dims[i], dims[i + 1])
                    for i in range(len(hidden_dims))]
    mean_params = _init_linear(keys[len(hidden_dims)], hidden_dims[-1], act_dim)
    logstd_params = _init_linear(keys[len(hidden_dims) + 1], hidden_dims[-1], act_dim)

    obs = jax.random.normal(keys[-1], (batch, obs_dim), jnp.float32)

    mean_ref, std_ref = _reference_forward(obs, trunk_params, mean_params,
                                           logstd_params)

    # f32 path. Tolerance allows for MXU default-precision differences vs the
    # HIGHEST-precision XLA reference while still catching structural bugs.
    mean, std = gaussian_actor_forward(obs, trunk_params, mean_params,
                                       logstd_params, param_dtype=jnp.float32)
    jax.block_until_ready((mean, std))
    assert mean.shape == (batch, act_dim) and std.shape == (batch, act_dim)
    assert bool(jnp.all(jnp.isfinite(mean))) and bool(jnp.all(jnp.isfinite(std)))
    assert jnp.allclose(mean, mean_ref, atol=1e-2, rtol=1e-2)
    assert jnp.allclose(std, std_ref, atol=1e-2, rtol=1e-2)

    # bf16 weight/matmul path (the default, for v6e/v7x): looser tolerance.
    mean_bf, std_bf = gaussian_actor_forward(obs, trunk_params, mean_params,
                                             logstd_params,
                                             param_dtype=jnp.bfloat16)
    jax.block_until_ready((mean_bf, std_bf))
    assert jnp.allclose(mean_bf, mean_ref, atol=5e-2, rtol=5e-2)
    assert jnp.allclose(std_bf, std_ref, atol=5e-2, rtol=5e-2)

    print("KERNEL_OK")
</pallas_src>

<mosaic_0001>
module attributes {stable_mosaic.version = 11 : i64} {
  func.func @kernel(%arg0: i32, %arg1: memref<16x16xf32, #tpu.memory_space<vmem>>, %arg2: memref<16x128xf32, #tpu.memory_space<vmem>>, %arg3: memref<1x128xf32, #tpu.memory_space<vmem>>, %arg4: memref<128x128xf32, #tpu.memory_space<vmem>>, %arg5: memref<1x128xf32, #tpu.memory_space<vmem>>, %arg6: memref<128x128xf32, #tpu.memory_space<vmem>>, %arg7: memref<1x128xf32, #tpu.memory_space<vmem>>, %arg8: memref<16x128xf32, #tpu.memory_space<vmem>>) attributes {dimension_semantics = [#tpu.dimension_semantics<parallel>], iteration_bounds = array<i64: 2>, scalar_prefetch = 0 : i64, scratch_operands = 0 : i64, tpu.core_type = #tpu.core_type<tc>, window_params = [{transform_indices = @transform_0, window_bounds = array<i64: 16, 16>}, {pipeline_mode = #tpu.pipeline_mode<synchronous>, transform_indices = @transform_1, window_bounds = array<i64: 16, 128>}, {pipeline_mode = #tpu.pipeline_mode<synchronous>, transform_indices = @transform_2, window_bounds = array<i64: 1, 128>}, {pipeline_mode = #tpu.pipeline_mode<synchronous>, transform_indices = @transform_3, window_bounds = array<i64: 128, 128>}, {pipeline_mode = #tpu.pipeline_mode<synchronous>, transform_indices = @transform_4, window_bounds = array<i64: 1, 128>}, {pipeline_mode = #tpu.pipeline_mode<synchronous>, transform_indices = @transform_5, window_bounds = array<i64: 128, 128>}, {pipeline_mode = #tpu.pipeline_mode<synchronous>, transform_indices = @transform_6, window_bounds = array<i64: 1, 128>}, {transform_indices = @transform_7, window_bounds = array<i64: 16, 128>}]} {
    %c0 = arith.constant 0 : index
    %c0_0 = arith.constant 0 : index
    %0 = vector.load %arg1[%c0, %c0_0] : memref<16x16xf32, #tpu.memory_space<vmem>>, vector<16x16xf32>
    %c0_1 = arith.constant 0 : index
    %c0_2 = arith.constant 0 : index
    %1 = vector.load %arg2[%c0_1, %c0_2] : memref<16x128xf32, #tpu.memory_space<vmem>>, vector<16x128xf32>
    %c0_3 = arith.constant 0 : index
    %c0_4 = arith.constant 0 : index
    %2 = vector.load %arg3[%c0_3, %c0_4] : memref<1x128xf32, #tpu.memory_space<vmem>>, vector<1x128xf32>
    %cst = arith.constant dense<0.000000e+00> : vector<16x128xf32>
    %3 = tpu.matmul %0, %1, %cst {dimension_numbers = #tpu.dot_dimension_numbers<[1], [0], [0], [1], [0, 0, 1, 1], [], []>} : vector<16x16xf32>, vector<16x128xf32>, vector<16x128xf32> -> vector<16x128xf32>
    %4 = vector.broadcast %2 : vector<1x128xf32> to vector<16x128xf32>
    %5 = arith.addf %3, %4 : vector<16x128xf32>
    %cst_5 = arith.constant 0.000000e+00 : f32
    %6 = vector.broadcast %cst_5 : f32 to vector<16x128xf32>
    %7 = arith.maximumf %5, %6 : vector<16x128xf32>
    %c0_6 = arith.constant 0 : index
    %c0_7 = arith.constant 0 : index
    %8 = vector.load %arg4[%c0_6, %c0_7] : memref<128x128xf32, #tpu.memory_space<vmem>>, vector<128x128xf32>
    %c0_8 = arith.constant 0 : index
    %c0_9 = arith.constant 0 : index
    %9 = vector.load %arg5[%c0_8, %c0_9] : memref<1x128xf32, #tpu.memory_space<vmem>>, vector<1x128xf32>
    %cst_10 = arith.constant dense<0.000000e+00> : vector<16x128xf32>
    %10 = tpu.matmul %7, %8, %cst_10 {dimension_numbers = #tpu.dot_dimension_numbers<[1], [0], [0], [1], [0, 0, 1, 1], [], []>} : vector<16x128xf32>, vector<128x128xf32>, vector<16x128xf32> -> vector<16x128xf32>
    %11 = vector.broadcast %9 : vector<1x128xf32> to vector<16x128xf32>
    %12 = arith.addf %10, %11 : vector<16x128xf32>
    %c0_11 = arith.constant 0 : index
    %c0_12 = arith.constant 0 : index
    %13 = vector.load %arg6[%c0_11, %c0_12] : memref<128x128xf32, #tpu.memory_space<vmem>>, vector<128x128xf32>
    %c0_13 = arith.constant 0 : index
    %c0_14 = arith.constant 0 : index
    %14 = vector.load %arg7[%c0_13, %c0_14] : memref<1x128xf32, #tpu.memory_space<vmem>>, vector<1x128xf32>
    %cst_15 = arith.constant dense<0.000000e+00> : vector<16x128xf32>
    %15 = tpu.matmul %12, %13, %cst_15 {dimension_numbers = #tpu.dot_dimension_numbers<[1], [0], [0], [1], [0, 0, 1, 1], [], []>} : vector<16x128xf32>, vector<128x128xf32>, vector<16x128xf32> -> vector<16x128xf32>
    %16 = vector.broadcast %14 : vector<1x128xf32> to vector<16x128xf32>
    %17 = arith.addf %15, %16 : vector<16x128xf32>
    %18 = tpu.iota {dimensions = array<i32: 1>} : vector<16x128xi32>
    %c8_i32 = arith.constant 8 : i32
    %19 = vector.broadcast %c8_i32 : i32 to vector<16x128xi32>
    %20 = arith.cmpi slt, %18, %19 : vector<16x128xi32>
    %21 = math.exp %17 : vector<16x128xf32>
    %22 = arith.select %20, %17, %21 : vector<16x128xi1>, vector<16x128xf32>
    %c0_16 = arith.constant 0 : index
    %c0_17 = arith.constant 0 : index
    %23 = vector.load %arg8[%c0_16, %c0_17] : memref<16x128xf32, #tpu.memory_space<vmem>>, vector<16x128xf32>
    tpu.vector_store %arg8[%c0_16, %c0_17], %22 {strides = array<i32>} : memref<16x128xf32, #tpu.memory_space<vmem>>, vector<16x128xf32>,
    return
  }
  func.func @transform_0(%arg0: i32) -> (i32, i32) {
    %c0_i32 = arith.constant 0 : i32
    %c0_i32_0 = arith.constant 0 : i32
    return %arg0, %c0_i32 : i32, i32
  }
  func.func @transform_1(%arg0: i32) -> (i32, i32) {
    %c0_i32 = arith.constant 0 : i32
    %c0_i32_0 = arith.constant 0 : i32
    %c0_i32_1 = arith.constant 0 : i32
    return %c0_i32, %c0_i32_0 : i32, i32
  }
  func.func @transform_2(%arg0: i32) -> (i32, i32) {
    %c0_i32 = arith.constant 0 : i32
    %c0_i32_0 = arith.constant 0 : i32
    %c0_i32_1 = arith.constant 0 : i32
    return %c0_i32, %c0_i32_0 : i32, i32
  }
  func.func @transform_3(%arg0: i32) -> (i32, i32) {
    %c0_i32 = arith.constant 0 : i32
    %c0_i32_0 = arith.constant 0 : i32
    %c0_i32_1 = arith.constant 0 : i32
    return %c0_i32, %c0_i32_0 : i32, i32
  }
  func.func @transform_4(%arg0: i32) -> (i32, i32) {
    %c0_i32 = arith.constant 0 : i32
    %c0_i32_0 = arith.constant 0 : i32
    %c0_i32_1 = arith.constant 0 : i32
    return %c0_i32, %c0_i32_0 : i32, i32
  }
  func.func @transform_5(%arg0: i32) -> (i32, i32) {
    %c0_i32 = arith.constant 0 : i32
    %c0_i32_0 = arith.constant 0 : i32
    %c0_i32_1 = arith.constant 0 : i32
    return %c0_i32, %c0_i32_0 : i32, i32
  }
  func.func @transform_6(%arg0: i32) -> (i32, i32) {
    %c0_i32 = arith.constant 0 : i32
    %c0_i32_0 = arith.constant 0 : i32
    %c0_i32_1 = arith.constant 0 : i32
    return %c0_i32, %c0_i32_0 : i32, i32
  }
  func.func @transform_7(%arg0: i32) -> (i32, i32) {
    %c0_i32 = arith.constant 0 : i32
    %c0_i32_0 = arith.constant 0 : i32
    return %arg0, %c0_i32 : i32, i32
  }
}

module attributes {stable_mosaic.version = 11 : i64} {
  func.func @kernel(%arg0: i32, %arg1: memref<16x16xf32, #tpu.memory_space<vmem>>, %arg2: memref<16x128xf32, #tpu.memory_space<vmem>>, %arg3: memref<1x128xf32, #tpu.memory_space<vmem>>, %arg4: memref<128x128xf32, #tpu.memory_space<vmem>>, %arg5: memref<1x128xf32, #tpu.memory_space<vmem>>, %arg6: memref<128x128xf32, #tpu.memory_space<vmem>>, %arg7: memref<1x128xf32, #tpu.memory_space<vmem>>, %arg8: memref<16x128xf32, #tpu.memory_space<vmem>>) attributes {dimension_semantics = [#tpu.dimension_semantics<parallel>], iteration_bounds = array<i64: 2>, scalar_prefetch = 0 : i64, scratch_operands = 0 : i64, tpu.core_type = #tpu.core_type<tc>, window_params = [{transform_indices = @transform_0, window_bounds = array<i64: 16, 16>}, {pipeline_mode = #tpu.pipeline_mode<synchronous>, transform_indices = @transform_1, window_bounds = array<i64: 16, 128>}, {pipeline_mode = #tpu.pipeline_mode<synchronous>, transform_indices = @transform_2, window_bounds = array<i64: 1, 128>}, {pipeline_mode = #tpu.pipeline_mode<synchronous>, transform_indices = @transform_3, window_bounds = array<i64: 128, 128>}, {pipeline_mode = #tpu.pipeline_mode<synchronous>, transform_indices = @transform_4, window_bounds = array<i64: 1, 128>}, {pipeline_mode = #tpu.pipeline_mode<synchronous>, transform_indices = @transform_5, window_bounds = array<i64: 128, 128>}, {pipeline_mode = #tpu.pipeline_mode<synchronous>, transform_indices = @transform_6, window_bounds = array<i64: 1, 128>}, {transform_indices = @transform_7, window_bounds = array<i64: 16, 128>}]} {
    %c0 = arith.constant 0 : index
    %c0_0 = arith.constant 0 : index
    %0 = vector.load %arg1[%c0, %c0_0] : memref<16x16xf32, #tpu.memory_space<vmem>>, vector<16x16xf32>
    %c0_1 = arith.constant 0 : index
    %c0_2 = arith.constant 0 : index
    %1 = vector.load %arg2[%c0_1, %c0_2] : memref<16x128xf32, #tpu.memory_space<vmem>>, vector<16x128xf32>
    %c0_3 = arith.constant 0 : index
    %c0_4 = arith.constant 0 : index
    %2 = vector.load %arg3[%c0_3, %c0_4] : memref<1x128xf32, #tpu.memory_space<vmem>>, vector<1x128xf32>
    %cst = arith.constant dense<0.000000e+00> : vector<16x128xf32>
    %3 = tpu.matmul %0, %1, %cst {dimension_numbers = #tpu.dot_dimension_numbers<[1], [0], [0], [1], [0, 0, 1, 1], [], []>} : vector<16x16xf32>, vector<16x128xf32>, vector<16x128xf32> -> vector<16x128xf32>
    %4 = vector.broadcast %2 : vector<1x128xf32> to vector<16x128xf32>
    %5 = arith.addf %3, %4 : vector<16x128xf32>
    %cst_5 = arith.constant 0.000000e+00 : f32
    %6 = vector.broadcast %cst_5 : f32 to vector<16x128xf32>
    %7 = arith.maximumf %5, %6 : vector<16x128xf32>
    %c0_6 = arith.constant 0 : index
    %c0_7 = arith.constant 0 : index
    %8 = vector.load %arg4[%c0_6, %c0_7] : memref<128x128xf32, #tpu.memory_space<vmem>>, vector<128x128xf32>
    %c0_8 = arith.constant 0 : index
    %c0_9 = arith.constant 0 : index
    %9 = vector.load %arg5[%c0_8, %c0_9] : memref<1x128xf32, #tpu.memory_space<vmem>>, vector<1x128xf32>
    %cst_10 = arith.constant dense<0.000000e+00> : vector<16x128xf32>
    %10 = tpu.matmul %7, %8, %cst_10 {dimension_numbers = #tpu.dot_dimension_numbers<[1], [0], [0], [1], [0, 0, 1, 1], [], []>} : vector<16x128xf32>, vector<128x128xf32>, vector<16x128xf32> -> vector<16x128xf32>
    %11 = vector.broadcast %9 : vector<1x128xf32> to vector<16x128xf32>
    %12 = arith.addf %10, %11 : vector<16x128xf32>
    %c0_11 = arith.constant 0 : index
    %c0_12 = arith.constant 0 : index
    %13 = vector.load %arg6[%c0_11, %c0_12] : memref<128x128xf32, #tpu.memory_space<vmem>>, vector<128x128xf32>
    %c0_13 = arith.constant 0 : index
    %c0_14 = arith.constant 0 : index
    %14 = vector.load %arg7[%c0_13, %c0_14] : memref<1x128xf32, #tpu.memory_space<vmem>>, vector<1x128xf32>
    %cst_15 = arith.constant dense<0.000000e+00> : vector<16x128xf32>
    %15 = tpu.matmul %12, %13, %cst_15 {dimension_numbers = #tpu.dot_dimension_numbers<[1], [0], [0], [1], [0, 0, 1, 1], [], []>} : vector<16x128xf32>, vector<128x128xf32>, vector<16x128xf32> -> vector<16x128xf32>
    %16 = vector.broadcast %14 : vector<1x128xf32> to vector<16x128xf32>
    %17 = arith.addf %15, %16 : vector<16x128xf32>
    %18 = tpu.iota {dimensions = array<i32: 1>} : vector<16x128xi32>
    %c8_i32 = arith.constant 8 : i32
    %19 = vector.broadcast %c8_i32 : i32 to vector<16x128xi32>
    %20 = arith.cmpi slt, %18, %19 : vector<16x128xi32>
    %21 = math.exp %17 : vector<16x128xf32>
    %22 = arith.select %20, %17, %21 : vector<16x128xi1>, vector<16x128xf32>
    %c0_16 = arith.constant 0 : index
    %c0_17 = arith.constant 0 : index
    %23 = vector.load %arg8[%c0_16, %c0_17] : memref<16x128xf32, #tpu.memory_space<vmem>>, vector<16x128xf32>
    tpu.vector_store %arg8[%c0_16, %c0_17], %22 {strides = array<i32>} : memref<16x128xf32, #tpu.memory_space<vmem>>, vector<16x128xf32>,
    return
  }
  func.func @transform_0(%arg0: i32) -> (i32, i32) {
    %c0_i32 = arith.constant 0 : i32
    %c0_i32_0 = arith.constant 0 : i32
    return %arg0, %c0_i32 : i32, i32
  }
  func.func @transform_1(%arg0: i32) -> (i32, i32) {
    %c0_i32 = arith.constant 0 : i32
    %c0_i32_0 = arith.constant 0 : i32
    %c0_i32_1 = arith.constant 0 : i32
    return %c0_i32, %c0_i32_0 : i32, i32
  }
  func.func @transform_2(%arg0: i32) -> (i32, i32) {
    %c0_i32 = arith.constant 0 : i32
    %c0_i32_0 = arith.constant 0 : i32
    %c0_i32_1 = arith.constant 0 : i32
    return %c0_i32, %c0_i32_0 : i32, i32
  }
  func.func @transform_3(%arg0: i32) -> (i32, i32) {
    %c0_i32 = arith.constant 0 : i32
    %c0_i32_0 = arith.constant 0 : i32
    %c0_i32_1 = arith.constant 0 : i32
    return %c0_i32, %c0_i32_0 : i32, i32
  }
  func.func @transform_4(%arg0: i32) -> (i32, i32) {
    %c0_i32 = arith.constant 0 : i32
    %c0_i32_0 = arith.constant 0 : i32
    %c0_i32_1 = arith.constant 0 : i32
    return %c0_i32, %c0_i32_0 : i32, i32
  }
  func.func @transform_5(%arg0: i32) -> (i32, i32) {
    %c0_i32 = arith.constant 0 : i32
    %c0_i32_0 = arith.constant 0 : i32
    %c0_i32_1 = arith.constant 0 : i32
    return %c0_i32, %c0_i32_0 : i32, i32
  }
  func.func @transform_6(%arg0: i32) -> (i32, i32) {
    %c0_i32 = arith.constant 0 : i32
    %c0_i32_0 = arith.constant 0 : i32
    %c0_i32_1 = arith.constant 0 : i32
    return %c0_i32, %c0_i32_0 : i32, i32
  }
  func.func @transform_7(%arg0: i32) -> (i32, i32) {
    %c0_i32 = arith.constant 0 : i32
    %c0_i32_0 = arith.constant 0 : i32
    return %arg0, %c0_i32 : i32, i32
  }
}

</mosaic_0001>

<bundles_post_ra>
// kernel: tpu_custom_call.1
= control target key start
LH: loop header
LB: loop body
LE: loop exit
PB: predicated region body
PF: predicated region fallthrough
CT: control target
= control target key end

     0   :  { %12 = vsyncpa [#allocation3], 0  ;;  %s1351_s0 = inlined_call_operand.vmem [shape: f32[32,16], index: 0, kind: input, shape index: {}]   ;;  %s1352_s1 = inlined_call_operand.vmem [shape: f32[16,128], index: 1, kind: input, shape index: {}]   ;;  %s1353_s2 = inlined_call_operand.vmem [shape: f32[1,128], index: 2, kind: input, shape index: {}]   ;;  %s1354_s3 = inlined_call_operand.hbm [shape: f32[128,128], index: 3, kind: input, shape index: {}]   ;;  %s1355_s4 = inlined_call_operand.vmem [shape: f32[1,128], index: 4, kind: input, shape index: {}]   ;;  %s1356_s5 = inlined_call_operand.hbm [shape: f32[128,128], index: 5, kind: input, shape index: {}]   ;;  %s1357_s6 = inlined_call_operand.vmem [shape: f32[1,128], index: 6, kind: input, shape index: {}]   ;;  %s1358_s7 = inlined_call_operand.hbm [shape: f32[32,128], index: 7, kind: output, shape index: {}]  }
   0x1   :  { %13 = vsyncpa [#allocation6], 0 }
   0x2   :  { %14 = vsyncpa [#allocation4], 0 }
   0x3   :  { %16 = vsyncpa [#allocation4 + $0x1], 0  ;;  %s1160_s24 = smov 0   ;;  %s1162_s25 = smov 0  }
   0x4   :  { %s1164_s26 = smov 0   ;;  %s1166_s27 = smov 0  }
   0x5 LB: > { %s1181_s28 = sadd.s32 4294967295, %s1111_s27   ;;  %s710_s29 = sadd.s32 4294967294, %s1111_s27   ;;  %s1111_s27 = sphi %s1166_s27, %s1378_s27   ;;  %s1107_s26 = sphi %s1164_s26, %s1377_s26   ;;  %s1103_s25 = sphi %s1162_s25, %s1376_s25   ;;  %s1099_s24 = sphi %s1160_s24, %s1375_s24  }
   0x6   : > { %s1185_s30 = sadd.s32 1, %s1111_s27   ;;  %s181_s8 = sadd.s32 1, %s1107_s26 }
   0x7   : > { %s178_s9 = ssub.s32 %s1111_s27, %s1185_s30  ;;  %p191_p0 = scmp.ne.s32.totalorder %s1107_s26, %s1103_s25 }
   0x8   : > { %p179_p1 = scmp.eq.s32.totalorder %s178_s9, 0  ;;  %p192_p2 = scmp.eq.s32.totalorder %s1181_s28, 1 }
   0x9   : > { %p197_p3 = scmp.ne.s32.totalorder %s1103_s25, %s1099_s24  ;;  %p198_p4 = scmp.eq.s32.totalorder %s710_s29, 1 }
   0xa   : > { %s1196_s10 = scalar_select %p179_p1, %s1107_s26, %s181_s8  }
   0xb   : > { %p1198_p5 = por %p192_p2, %p191_p0  ;;  %p1202_p6 = por %p198_p4, %p197_p3 }
   0xc   : > { %1362 = sst [smem:[#allocation11_spill]] %s1196_s10  ;;  %p711_p7 = scmp.ge.s32.totalorder %s1111_s27, 1 }
   0xd   : > { %s1363_s11 = scalar_select %p1198_p5, 1, 0 }
   0xe   : > { %s1364_s12 = scalar_select %p1202_p6, 1, 0 }
   0xf   : > { %p205_p8 = scmp.lt.s32.totalorder %s1111_s27, 3  ;;  %p1359_p9 = scmp.eq.s32.totalorder %s1181_s28, 0 }
  0x10   : > { %s1113_s14 = smov [#allocation2]   ;;  %s1114_s17 = smov [#allocation5]  }
  0x11   : > { %p1209_p10 = pnand %p711_p7, %p205_p8  ;;  %s223_s15 = sshll.u32 %s1113_s14, 4  ;;  %s224_s15 = int_to_ptr.vmem [resolvable:$true] %s223_s15 }
  0x12   : > { %s239_s18 = sshll.u32 %s1114_s17, 4  ;;  %s985_s21 = scalar_lea.hbm %s1354_s3, 2048  ;;  %s1221_s18 = int_to_ptr.vmem [resolvable:$true] %s239_s18 }
  0x13   : > { %s1365_s13 = scalar_select %p1209_p10, 1, 0 }
  0x14   : > { %p927_p11 = pneg %p1209_p10  ;;  %p986_p13 = scmp.ne.s32.totalorder %s1354_s3, %s985_s21 }
  0x15   : > { %p992_p3 = scmp.lt.u32.totalorder %s985_s21, %s1354_s3 }
  0x16   : > { %p1217_p12 = pnand %p1359_p9, %p927_p11 }
  0x18   : > { %p987_p0 = pneg %p1217_p12 }
  0x1a   : > { %p988_p1 = pnand %p987_p0, %p986_p13 }
  0x1c   : > { %p989_p2 = pneg %p988_p1 }
  0x1e   : > { %p994_p4 = pnand %p992_p3, %p989_p2 }
  0x20   : > { %997 = shalt.err (!%p994_p4)
}
  0x21   : > { %s998_s9 = scalar_lea.vmem %s224_s15, 2048  ;;  %p1006_p9 = scmp.lt.s32.totalorder %s224_s15, %s224_s15 }
  0x22   : > { %p999_p7 = scmp.ne.s32.totalorder %s224_s15, %s998_s9  ;;  %p1007_p6 = scmp.lt.s32.totalorder %s998_s9, %s998_s9 }
  0x24   : > { %p1001_p8 = pnand %p999_p7, %p987_p0  ;;  %p1008_p5 = por %p1007_p6, %p1006_p9 }
  0x26   : > { %p1002_p11 = pneg %p1001_p8 }
  0x28   : > { %p1009_p10 = pnand %p1008_p5, %p1002_p11 }
  0x2a   : > { %1012 = shalt.err (!%p1009_p10)
}
  0x2b   : > { %s1115_s14 = smov 128   ;;  %s1116_s17 = smov 8  }
  0x2c   : > { %930 = dma.hbm_to_vmem [thread:$0]  (!%p1217_p12), %s1354_s3, 2048, %s224_s15, [#allocation3], %s1115_s14, %s1115_s14, %s1116_s17  }
  0x2d   : > { %s1013_s23 = scalar_lea.hbm %s1356_s5, 2048 }
  0x2e   : > { %p1014_p13 = scmp.ne.s32.totalorder %s1356_s5, %s1013_s23  ;;  %p1020_p9 = scmp.lt.u32.totalorder %s1013_s23, %s1356_s5 }
  0x30   : > { %p1016_p5 = pnand %p1014_p13, %p987_p0 }
  0x32   : > { %p1017_p6 = pneg %p1016_p5 }
  0x34   : > { %p1022_p10 = pnand %p1020_p9, %p1017_p6 }
  0x36   : > { %1025 = shalt.err (!%p1022_p10)
}
  0x37   : > { %s1026_s15 = scalar_lea.vmem %s1221_s18, 2048  ;;  %p1034_p4 = scmp.lt.s32.totalorder %s1221_s18, %s1221_s18 }
  0x38   : > { %p1027_p1 = scmp.ne.s32.totalorder %s1221_s18, %s1026_s15  ;;  %p1035_p7 = scmp.lt.s32.totalorder %s1026_s15, %s1026_s15 }
  0x3a   : > { %p1029_p2 = pnand %p1027_p1, %p987_p0  ;;  %p1036_p8 = por %p1035_p7, %p1034_p4 }
  0x3c   : > { %p1030_p3 = pneg %p1029_p2 }
  0x3e   : > { %p1037_p11 = pnand %p1036_p8, %p1030_p3 }
  0x40   : > { %1040 = shalt.err (!%p1037_p11)
}
  0x41   : > { %933 = dma.hbm_to_vmem [thread:$0]  (!%p1217_p12), %s1356_s5, 2048, %s1221_s18, [#allocation6], %s1115_s14, %s1115_s14, %s1116_s17  }
  0x42   : > { %p1367_p13 = scmp.ne.s32.totalorder %s1365_s13, 0 }
  0x43   : > { %p1368_p5 = scmp.eq.s32.totalorder (!%p1367_p13), %s1181_s28, 0 }
  0x44   : > { %267 = sbr.rel (%p1367_p13) target bundleno = 766 (0x2fe), region = 48 }
  0x4b   : > { %1086 = dma.done.wait (%p1368_p5), [#allocation3], 2048   ;;  %p1369_p0 = pmov %p1368_p5 }
  0x4d   : > { %1088 = vsyncadd (%p1369_p0), [#allocation3], 4294965248  ;;  %p1370_p6 = pmov %p1369_p0 }
  0x4e   : > { %p1371_p9 = pmov %p1369_p0 }
  0x4f   : > { %1090 = dma.done.wait (%p1370_p6), [#allocation6], 2048  }
  0x50   : > { %1092 = vsyncadd (%p1371_p9), [#allocation6], 4294965248  ;;  %s719_s16 = sshll.u32 %s1181_s28, 1  ;;  %vm321_vm0 = vcmask 130048   ;;  %v312_v0 = vld [vmem:[%s1352_s1] sm:$0xff]  ;;  %v313_v1 = vld [vmem:[%s1352_s1 + $0x8] sm:$0xff] }
  0x51   : > { %p304_p10 = scmp.lt.s32.totalorder %s719_s16, 3  ;;  %v849_v3 = vpack.c.bf16 %v313_v1, %v312_v0  ;;  %v405_v4 = vld [vmem:[#allocation2] sm:$0xff]  ;;  %v406_v5 = vld [vmem:[#allocation2 + $0x8] sm:$0xff]  ;;  %v407_v7 = vld [vmem:[#allocation2 + $0x10] sm:$0xff]  ;;  %p1372_p1 = scmp.ne.s32.totalorder %s1363_s11, 0 }
  0x52   : > { %v853_v6 = vpack.c.bf16 %v406_v5, %v405_v4  ;;  %v408_v8 = vld [vmem:[#allocation2 + $0x18] sm:$0xff]  ;;  %v409_v10 = vld [vmem:[#allocation2 + $0x20] sm:$0xff]  ;;  %v410_v11 = vld [vmem:[#allocation2 + $0x28] sm:$0xff]  ;;  %s1117_s29 = smov [#allocation7]  }
  0x53   : > { %s1380_s16 = smov (!%p304_p10, %s719_s16), 3  ;;  %850 = vmatprep.subr.bf16.mxu0 %v849_v3  ;;  %v857_v9 = vpack.c.bf16 %v408_v8, %v407_v7  ;;  %v861_v13 = vpack.c.bf16 %v410_v11, %v409_v10  ;;  %v411_v14 = vld [vmem:[#allocation2 + $0x30] sm:$0xff]  ;;  %v412_v15 = vld [vmem:[#allocation2 + $0x38] sm:$0xff]  ;;  %v413_v17 = vld [vmem:[#allocation2 + $0x40] sm:$0xff]  ;;  %v601_v8 = vlaneseq  ;;  %s1045_s8 = sshll.u32 %s1117_s29, 4  ;;  %s1046_s8 = int_to_ptr.vmem [resolvable:$false] %s1045_s8 }
  0x54   : > { %s720_s18 = sshll.u32 %s1380_s16, 3  ;;  %852 = vmatpush3.bf16.msra.mxu0 %v849_v3  ;;  %854 = vmatprep.subr.bf16.mxu1 %v853_v6  ;;  %v865_v16 = vpack.c.bf16 %v412_v15, %v411_v14  ;;  %v414_v18 = vld [vmem:[#allocation2 + $0x48] sm:$0xff]  ;;  %v415_v20 = vld [vmem:[#allocation2 + $0x50] sm:$0xff]  ;;  %v416_v21 = vld [vmem:[#allocation2 + $0x58] sm:$0xff]  ;;  %s300_s16 = sand.u32 1, %s1103_s25  }
  0x55   : > { %s307_s17 = scalar_lea.vmem %s1351_s0, %s720_s18  ;;  %856 = vmatpush3.bf16.msra.mxu1 %v853_v6  ;;  %v869_v19 = vpack.c.bf16 %v414_v18, %v413_v17  ;;  %v873_v22 = vpack.c.bf16 %v416_v21, %v415_v20  ;;  %v417_v23 = vld [vmem:[#allocation2 + $0x60] sm:$0xff]  ;;  %v418_v24 = vld [vmem:[#allocation2 + $0x68] sm:$0xff]  ;;  %v419_v26 = vld [vmem:[#allocation2 + $0x70] sm:$0xff]  ;;  %s718_s18 = sshll.u32 %s300_s16, 4 }
  0x56   : > { %v310_v2 = vld [vmem:[%s307_s17] sm:$0xff]  ;;  %v311_v12 = vld [vmem:[%s307_s17 + $0x8] sm:$0xff]  ;;  %858 = vmatprep.subr.bf16.mxu1 %v857_v9  ;;  %v877_v25 = vpack.c.bf16 %v418_v24, %v417_v23  ;;  %v420_v27 = vld [vmem:[#allocation2 + $0x78] sm:$0xff]  ;;  %s302_s13 = scalar_lea.vmem [#allocation7], %s718_s18  ;;  %s731_s17 = sshll.u32 %s1181_s28, 8 }
  0x57   : > { %776 = vmatprep.mubr.msk.f32.mxu0 %vm321_vm0, %v310_v2  ;;  %v881_v28 = vpack.c.bf16 %v420_v27, %v419_v26  ;;  %v503_v29 = vld [vmem:[#allocation5] sm:$0xff]  ;;  %v504_v30 = vld [vmem:[#allocation5 + $0x8] sm:$0xff]  ;;  %v505_v31 = vld [vmem:[#allocation5 + $0x10] sm:$0xff]  ;;  %s626_s14 = sshll.u32 %s302_s13, 4  ;;  %s1308_s22 = scalar_lea.hbm %s1358_s7, %s731_s17  ;;  %s1303_s14 = int_to_ptr.vmem [resolvable:$true] %s626_s14 }
  0x58   : > { %777 = vmatmul.mubr.msk.f32.vlgmr.msra.gmra.mrb[0].mxu0 %vm321_vm0, %v311_v12  ;;  %v885_v32 = vpack.c.bf16 %v504_v30, %v503_v29  ;;  %v506_v33 = vld [vmem:[#allocation5 + $0x18] sm:$0xff]  ;;  %v507_v35 = vld [vmem:[#allocation5 + $0x20] sm:$0xff]  ;;  %v508_v36 = vld [vmem:[#allocation5 + $0x28] sm:$0xff]  ;;  %s1310_s23 = scalar_lea.sflag [#allocation4], %s300_s16  ;;  %s1041_s28 = scalar_lea.vmem %s1303_s14, 256 }
  0x59   : > { %860 = vmatpush3.bf16.msra.mxu1 %v857_v9  ;;  %v889_v34 = vpack.c.bf16 %v506_v33, %v505_v31  ;;  %v893_v37 = vpack.c.bf16 %v508_v36, %v507_v35  ;;  %v509_v38 = vld [vmem:[#allocation5 + $0x30] sm:$0xff]  ;;  %v510_v39 = vld [vmem:[#allocation5 + $0x38] sm:$0xff]  ;;  %v511_v41 = vld [vmem:[#allocation5 + $0x40] sm:$0xff]  ;;  %v602_v9 = vand.u32 127, %v601_v8  ;;  %p1042_p12 = scmp.ne.s32.totalorder %s1303_s14, %s1041_s28  ;;  %s1047_s9 = scalar_lea.vmem %s1046_s8, 512 }
  0x5a   : > { %862 = vmatprep.subr.bf16.mxu1 %v861_v13  ;;  %886 = vmatprep.subr.bf16.mxu0 %v885_v32  ;;  %v897_v40 = vpack.c.bf16 %v510_v39, %v509_v38  ;;  %v512_v42 = vld [vmem:[#allocation5 + $0x48] sm:$0xff]  ;;  %v513_v44 = vld [vmem:[#allocation5 + $0x50] sm:$0xff]  ;;  %v514_v45 = vld [vmem:[#allocation5 + $0x58] sm:$0xff]  ;;  %p1048_p4 = scmp.lt.s32.totalorder %s1303_s14, %s1046_s8  ;;  %p1049_p7 = scmp.lt.s32.totalorder %s1047_s9, %s1041_s28 }
  0x5b   : > { %888 = vmatpush3.bf16.msra.mxu0 %v885_v32  ;;  %v901_v43 = vpack.c.bf16 %v512_v42, %v511_v41  ;;  %v905_v46 = vpack.c.bf16 %v514_v45, %v513_v44  ;;  %v515_v47 = vld [vmem:[#allocation5 + $0x60] sm:$0xff]  ;;  %v516_v48 = vld [vmem:[#allocation5 + $0x68] sm:$0xff]  ;;  %v517_v57 = vld [vmem:[#allocation5 + $0x70] sm:$0xff]  ;;  %vm603_vm1 = vcmp.lt.s32.totalorder %v602_v9, 8  ;;  %p1043_p2 = pnand %p1042_p12, %p1372_p1 }
  0x5c   : > { %890 = vmatprep.subr.bf16.mxu0 %v889_v34  ;;  %v909_v49 = vpack.c.bf16 %v516_v48, %v515_v47  ;;  %v721_v50 = vld [vmem:[%s1353_s2] ss:$0 sm:$0xff]  ;;  %v518_v58 = vld [vmem:[#allocation5 + $0x78] sm:$0xff]  ;;  %p1050_p8 = por %p1049_p7, %p1048_p4 }
  0x5d   : > { %864 = vmatpush3.bf16.msra.mxu1 %v861_v13  ;;  %v913_v59 = vpack.c.bf16 %v518_v58, %v517_v57  ;;  %v724_v60 = vld [vmem:[%s1355_s4] ss:$0 sm:$0xff]  ;;  %p1044_p3 = pneg %p1043_p2 }
  0x5e   : > { %866 = vmatprep.subr.bf16.mxu1 %v865_v16  ;;  %v725_v1 = vld [vmem:[%s1357_s6] ss:$0 sm:$0xff] }
  0x5f   : > { %892 = vmatpush3.bf16.msra.mxu0 %v889_v34  ;;  %p1051_p11 = pnand %p1050_p8, %p1044_p3 }
  0x60   : > { %894 = vmatprep.subr.bf16.mxu0 %v893_v37 }
  0x61   : > { %868 = vmatpush3.bf16.msra.mxu1 %v865_v16 }
  0x62   : > { %870 = vmatprep.subr.bf16.mxu1 %v869_v19 }
  0x63   : > { %896 = vmatpush3.bf16.msra.mxu0 %v893_v37 }
  0x64   : > { %898 = vmatprep.subr.bf16.mxu0 %v897_v40 }
  0x65   : > { %872 = vmatpush3.bf16.msra.mxu1 %v869_v19 }
  0x66   : > { %874 = vmatprep.subr.bf16.mxu1 %v873_v22 }
  0x67   : > { %900 = vmatpush3.bf16.msra.mxu0 %v897_v40 }
  0x68   : > { %902 = vmatprep.subr.bf16.mxu0 %v901_v43 }
  0x69   : > { %876 = vmatpush3.bf16.msra.mxu1 %v873_v22 }
  0x6a   : > { %878 = vmatprep.subr.bf16.mxu1 %v877_v25 }
  0x6b   : > { %904 = vmatpush3.bf16.msra.mxu0 %v901_v43 }
  0x6c   : > { %906 = vmatprep.subr.bf16.mxu0 %v905_v46 }
  0x6d   : > { %880 = vmatpush3.bf16.msra.mxu1 %v877_v25 }
  0x6e   : > { %882 = vmatprep.subr.bf16.mxu1 %v881_v28 }
  0x6f   : > { %908 = vmatpush3.bf16.msra.mxu0 %v905_v46 }
  0x70   : > { %910 = vmatprep.subr.bf16.mxu0 %v909_v49 }
  0x71   : > { %884 = vmatpush3.bf16.msra.mxu1 %v881_v28 }
  0x73   : > { %912 = vmatpush3.bf16.msra.mxu0 %v909_v49 }
  0x74   : > { %914 = vmatprep.subr.bf16.mxu0 %v913_v59 }
  0x77   : > { %916 = vmatpush3.bf16.msra.mxu0 %v913_v59 }
 0x12b   : > { %v778_v51 = vpop.f32.mrb[0].mxu0 }
 0x12c   : > { %v400_v52 = vadd.f32 %v778_v51, %v721_v50  ;;  %v394_v53 = vpop.f32.mrb[1].mxu0 }
 0x12d   : > { %v395_v54 = vadd.f32 %v721_v50, %v394_v53 }
 0x12e   : > { %v404_v56 = vmax.f32 %v400_v52, 0.0 }
 0x12f   : > { %v403_v55 = vmax.f32 %v395_v54, 0.0 }
 0x131   : > { %811 = vmatprep.mubr.f32.mxu1 %v403_v55 }
 0x132   : > { %812 = vmatmul.mubr.f32.vlgmr.msra.gmra.mrb[0].mxu1 %v404_v56 }
 0x205   : > { %v813_v61 = vpop.f32.mrb[0].mxu1 }
 0x206   : > { %v494_v62 = vpop.f32.mrb[1].mxu1  ;;  %v500_v0 = vadd.f32 %v813_v61, %v724_v60 }
 0x207   : > { %v495_v63 = vadd.f32 %v724_v60, %v494_v62 }
 0x209   : > { %846 = vmatprep.mubr.f32.mxu0 %v495_v63 }
 0x20a   : > { %847 = vmatmul.mubr.f32.vlgmr.msra.gmra.mrb[2].mxu0 %v500_v0 }
 0x2dd   : > { %v848_v2 = vpop.f32.mrb[2].mxu0 }
 0x2de   : > { %v598_v3 = vadd.f32 %v848_v2, %v725_v1  ;;  %v592_v4 = vpop.f32.mrb[3].mxu0 }
 0x2df   : > { %v593_v5 = vadd.f32 %v725_v1, %v592_v4 }
 0x2e0   : > { %v606_v6 = vmul.f32 1.442695, %v598_v3 }
 0x2e1   : > { %v604_v7 = vmul.f32 1.442695, %v593_v5 }
 0x2e2   : > { %981 = vpow2.f32 %v606_v6 }
 0x2e3   : > { %983 = vpow2.f32 %v604_v7 }
 0x2ec   : > { %v982_v10 = vpop.eup %981 }
 0x2ed   : > { %v984_v11 = vpop.eup %983  ;;  %v609_v12 = vsel %vm603_vm1, %v598_v3, %v982_v10 }
 0x2ee   : > { %611 = vst [vmem:[%s302_s13 + $0x8] sm:$0xff] %v609_v12  ;;  %v608_v13 = vsel %vm603_vm1, %v593_v5, %v984_v11 }
 0x2ef   : > { %610 = vst [vmem:[%s302_s13] sm:$0xff] %v608_v13 }
 0x2f0   : > { %1054 = shalt.err (!%p1051_p11)
}
 0x2f1   : > { %s1055_s15 = scalar_lea.hbm %s1308_s22, 256  ;;  %s1059_s16 = scalar_lea.hbm %s1358_s7, 512 }
 0x2f2   : > { %p1056_p13 = scmp.ne.s32.totalorder %s1308_s22, %s1055_s15  ;;  %p1060_p6 = scmp.lt.u32.totalorder %s1308_s22, %s1358_s7 }
 0x2f3   : > { %p1061_p9 = scmp.lt.u32.totalorder %s1059_s16, %s1055_s15  ;;  %p1063_p12 = scmp.lt.u32.totalorder %s1055_s15, %s1308_s22 }
 0x2f4   : > { %p1057_p5 = pnand %p1056_p13, %p1372_p1 }
 0x2f5   : > { %p1062_p10 = por %p1061_p9, %p1060_p6 }
 0x2f6   : > { %p1058_p0 = pneg %p1057_p5 }
 0x2f7   : > { %p1064_p2 = por %p1063_p12, %p1062_p10 }
 0x2f9   : > { %p1065_p3 = pnand %p1064_p2, %p1058_p0 }
 0x2fb   : > { %1068 = shalt.err (!%p1065_p3)
}
 0x2fc   : > { %s1118_s17 = smov 128   ;;  %s1119_s20 = smov 8  }
 0x2fd   : > { %925 = dma.vmem_to_hbm [thread:$0]  (%p1372_p1), %s1303_s14, 256, %s1308_s22, %s1310_s23, %s1118_s17, %s1118_s17, %s1119_s20  }
 0x2fe PF: > { %p942_p4 = scmp.ge.s32.totalorder %s1111_s27, 2  ;;  %s641_s21 = sand.u32 1, %s1099_s24  }
 0x2ff   : > { %p1373_p7 = scmp.ne.s32.totalorder %s1364_s12, 0  ;;  %s642_s28 = scalar_lea.sflag [#allocation4], %s641_s21 }
 0x301   : > { %p935_p8 = pnand %p942_p4, %p1373_p7 }
 0x303   : > { %1094 = dma.done.wait (!%p935_p8), %s642_s28, 256  }
 0x304   : > { %1096 = vsyncadd (!%p935_p8), %s642_s28, 4294967040  ;;  %s1374_s29 = sld [smem:[#allocation11_spill]]  ;;  %p19_p11 = scmp.ge.s32.totalorder %s1185_s30, 4  }
 0x305   : > { %s1375_s24 = smov %s1103_s25  ;;  %s1376_s25 = smov %s1107_s26 }
 0x306   : > { %s1378_s27 = smov %s1185_s30  ;;  %21 = sbr.rel (!%p19_p11) target bundleno = 5 (0x5), region = 92 }
 0x30a   : > { %s1377_s26 = smov %s1374_s29 }
 0x30d   :  { %647 = vsyncpa [#allocation3], 1 }
 0x30e   :  { %649 = vsyncpa [#allocation3 + $0x1], 1 }
 0x30f   :  { %650 = vsyncpa [#allocation6], 1 }
 0x310   :  { %651 = vsyncpa [#allocation4], 1 }
 0x311   :  { %653 = vsyncpa [#allocation4 + $0x1], 1 }

// kernel: tpu_custom_call.1
= control target key start
LH: loop header
LB: loop body
LE: loop exit
PB: predicated region body
PF: predicated region fallthrough
CT: control target
= control target key end

     0   :  { %12 = vsyncpa [#allocation3], 0  ;;  %s1351_s0 = inlined_call_operand.vmem [shape: f32[32,16], index: 0, kind: input, shape index: {}]   ;;  %s1352_s1 = inlined_call_operand.vmem [shape: f32[16,128], index: 1, kind: input, shape index: {}]   ;;  %s1353_s2 = inlined_call_operand.vmem [shape: f32[1,128], index: 2, kind: input, shape index: {}]   ;;  %s1354_s3 = inlined_call_operand.hbm [shape: f32[128,128], index: 3, kind: input, shape index: {}]   ;;  %s1355_s4 = inlined_call_operand.vmem [shape: f32[1,128], index: 4, kind: input, shape index: {}]   ;;  %s1356_s5 = inlined_call_operand.hbm [shape: f32[128,128], index: 5, kind: input, shape index: {}]   ;;  %s1357_s6 = inlined_call_operand.vmem [shape: f32[1,128], index: 6, kind: input, shape index: {}]   ;;  %s1358_s7 = inlined_call_operand.hbm [shape: f32[32,128], index: 7, kind: output, shape index: {}]  }
   0x1   :  { %13 = vsyncpa [#allocation6], 0 }
   0x2   :  { %14 = vsyncpa [#allocation4], 0 }
   0x3   :  { %16 = vsyncpa [#allocation4 + $0x1], 0  ;;  %s1160_s24 = smov 0   ;;  %s1162_s25 = smov 0  }
   0x4   :  { %s1164_s26 = smov 0   ;;  %s1166_s27 = smov 0  }
   0x5 LB: > { %s1181_s28 = sadd.s32 4294967295, %s1111_s27   ;;  %s710_s29 = sadd.s32 4294967294, %s1111_s27   ;;  %s1111_s27 = sphi %s1166_s27, %s1378_s27   ;;  %s1107_s26 = sphi %s1164_s26, %s1377_s26   ;;  %s1103_s25 = sphi %s1162_s25, %s1376_s25   ;;  %s1099_s24 = sphi %s1160_s24, %s1375_s24  }
   0x6   : > { %s1185_s30 = sadd.s32 1, %s1111_s27   ;;  %s181_s8 = sadd.s32 1, %s1107_s26 }
   0x7   : > { %s178_s9 = ssub.s32 %s1111_s27, %s1185_s30  ;;  %p191_p0 = scmp.ne.s32.totalorder %s1107_s26, %s1103_s25 }
   0x8   : > { %p179_p1 = scmp.eq.s32.totalorder %s178_s9, 0  ;;  %p192_p2 = scmp.eq.s32.totalorder %s1181_s28, 1 }
   0x9   : > { %p197_p3 = scmp.ne.s32.totalorder %s1103_s25, %s1099_s24  ;;  %p198_p4 = scmp.eq.s32.totalorder %s710_s29, 1 }
   0xa   : > { %s1196_s10 = scalar_select %p179_p1, %s1107_s26, %s181_s8  }
   0xb   : > { %p1198_p5 = por %p192_p2, %p191_p0  ;;  %p1202_p6 = por %p198_p4, %p197_p3 }
   0xc   : > { %1362 = sst [smem:[#allocation11_spill]] %s1196_s10  ;;  %p711_p7 = scmp.ge.s32.totalorder %s1111_s27, 1 }
   0xd   : > { %s1363_s11 = scalar_select %p1198_p5, 1, 0 }
   0xe   : > { %s1364_s12 = scalar_select %p1202_p6, 1, 0 }
   0xf   : > { %p205_p8 = scmp.lt.s32.totalorder %s1111_s27, 3  ;;  %p1359_p9 = scmp.eq.s32.totalorder %s1181_s28, 0 }
  0x10   : > { %s1113_s14 = smov [#allocation2]   ;;  %s1114_s17 = smov [#allocation5]  }
  0x11   : > { %p1209_p10 = pnand %p711_p7, %p205_p8  ;;  %s223_s15 = sshll.u32 %s1113_s14, 4  ;;  %s224_s15 = int_to_ptr.vmem [resolvable:$true] %s223_s15 }
  0x12   : > { %s239_s18 = sshll.u32 %s1114_s17, 4  ;;  %s985_s21 = scalar_lea.hbm %s1354_s3, 2048  ;;  %s1221_s18 = int_to_ptr.vmem [resolvable:$true] %s239_s18 }
  0x13   : > { %s1365_s13 = scalar_select %p1209_p10, 1, 0 }
  0x14   : > { %p927_p11 = pneg %p1209_p10  ;;  %p986_p13 = scmp.ne.s32.totalorder %s1354_s3, %s985_s21 }
  0x15   : > { %p992_p3 = scmp.lt.u32.totalorder %s985_s21, %s1354_s3 }
  0x16   : > { %p1217_p12 = pnand %p1359_p9, %p927_p11 }
  0x18   : > { %p987_p0 = pneg %p1217_p12 }
  0x1a   : > { %p988_p1 = pnand %p987_p0, %p986_p13 }
  0x1c   : > { %p989_p2 = pneg %p988_p1 }
  0x1e   : > { %p994_p4 = pnand %p992_p3, %p989_p2 }
  0x20   : > { %997 = shalt.err (!%p994_p4)
}
  0x21   : > { %s998_s9 = scalar_lea.vmem %s224_s15, 2048  ;;  %p1006_p9 = scmp.lt.s32.totalorder %s224_s15, %s224_s15 }
  0x22   : > { %p999_p7 = scmp.ne.s32.totalorder %s224_s15, %s998_s9  ;;  %p1007_p6 = scmp.lt.s32.totalorder %s998_s9, %s998_s9 }
  0x24   : > { %p1001_p8 = pnand %p999_p7, %p987_p0  ;;  %p1008_p5 = por %p1007_p6, %p1006_p9 }
  0x26   : > { %p1002_p11 = pneg %p1001_p8 }
  0x28   : > { %p1009_p10 = pnand %p1008_p5, %p1002_p11 }
  0x2a   : > { %1012 = shalt.err (!%p1009_p10)
}
  0x2b   : > { %s1115_s14 = smov 128   ;;  %s1116_s17 = smov 8  }
  0x2c   : > { %930 = dma.hbm_to_vmem [thread:$0]  (!%p1217_p12), %s1354_s3, 2048, %s224_s15, [#allocation3], %s1115_s14, %s1115_s14, %s1116_s17  }
  0x2d   : > { %s1013_s23 = scalar_lea.hbm %s1356_s5, 2048 }
  0x2e   : > { %p1014_p13 = scmp.ne.s32.totalorder %s1356_s5, %s1013_s23  ;;  %p1020_p9 = scmp.lt.u32.totalorder %s1013_s23, %s1356_s5 }
  0x30   : > { %p1016_p5 = pnand %p1014_p13, %p987_p0 }
  0x32   : > { %p1017_p6 = pneg %p1016_p5 }
  0x34   : > { %p1022_p10 = pnand %p1020_p9, %p1017_p6 }
  0x36   : > { %1025 = shalt.err (!%p1022_p10)
}
  0x37   : > { %s1026_s15 = scalar_lea.vmem %s1221_s18, 2048  ;;  %p1034_p4 = scmp.lt.s32.totalorder %s1221_s18, %s1221_s18 }
  0x38   : > { %p1027_p1 = scmp.ne.s32.totalorder %s1221_s18, %s1026_s15  ;;  %p1035_p7 = scmp.lt.s32.totalorder %s1026_s15, %s1026_s15 }
  0x3a   : > { %p1029_p2 = pnand %p1027_p1, %p987_p0  ;;  %p1036_p8 = por %p1035_p7, %p1034_p4 }
  0x3c   : > { %p1030_p3 = pneg %p1029_p2 }
  0x3e   : > { %p1037_p11 = pnand %p1036_p8, %p1030_p3 }
  0x40   : > { %1040 = shalt.err (!%p1037_p11)
}
  0x41   : > { %933 = dma.hbm_to_vmem [thread:$0]  (!%p1217_p12), %s1356_s5, 2048, %s1221_s18, [#allocation6], %s1115_s14, %s1115_s14, %s1116_s17  }
  0x42   : > { %p1367_p13 = scmp.ne.s32.totalorder %s1365_s13, 0 }
  0x43   : > { %p1368_p5 = scmp.eq.s32.totalorder (!%p1367_p13), %s1181_s28, 0 }
  0x44   : > { %267 = sbr.rel (%p1367_p13) target bundleno = 766 (0x2fe), region = 48 }
  0x4b   : > { %1086 = dma.done.wait (%p1368_p5), [#allocation3], 2048   ;;  %p1369_p0 = pmov %p1368_p5 }
  0x4d   : > { %1088 = vsyncadd (%p1369_p0), [#allocation3], 4294965248  ;;  %p1370_p6 = pmov %p1369_p0 }
  0x4e   : > { %p1371_p9 = pmov %p1369_p0 }
  0x4f   : > { %1090 = dma.done.wait (%p1370_p6), [#allocation6], 2048  }
  0x50   : > { %1092 = vsyncadd (%p1371_p9), [#allocation6], 4294965248  ;;  %s719_s16 = sshll.u32 %s1181_s28, 1  ;;  %vm321_vm0 = vcmask 130048   ;;  %v312_v0 = vld [vmem:[%s1352_s1] sm:$0xff]  ;;  %v313_v1 = vld [vmem:[%s1352_s1 + $0x8] sm:$0xff] }
  0x51   : > { %p304_p10 = scmp.lt.s32.totalorder %s719_s16, 3  ;;  %v849_v3 = vpack.c.bf16 %v313_v1, %v312_v0  ;;  %v405_v4 = vld [vmem:[#allocation2] sm:$0xff]  ;;  %v406_v5 = vld [vmem:[#allocation2 + $0x8] sm:$0xff]  ;;  %v407_v7 = vld [vmem:[#allocation2 + $0x10] sm:$0xff]  ;;  %p1372_p1 = scmp.ne.s32.totalorder %s1363_s11, 0 }
  0x52   : > { %v853_v6 = vpack.c.bf16 %v406_v5, %v405_v4  ;;  %v408_v8 = vld [vmem:[#allocation2 + $0x18] sm:$0xff]  ;;  %v409_v10 = vld [vmem:[#allocation2 + $0x20] sm:$0xff]  ;;  %v410_v11 = vld [vmem:[#allocation2 + $0x28] sm:$0xff]  ;;  %s1117_s29 = smov [#allocation7]  }
  0x53   : > { %s1380_s16 = smov (!%p304_p10, %s719_s16), 3  ;;  %850 = vmatprep.subr.bf16.mxu0 %v849_v3  ;;  %v857_v9 = vpack.c.bf16 %v408_v8, %v407_v7  ;;  %v861_v13 = vpack.c.bf16 %v410_v11, %v409_v10  ;;  %v411_v14 = vld [vmem:[#allocation2 + $0x30] sm:$0xff]  ;;  %v412_v15 = vld [vmem:[#allocation2 + $0x38] sm:$0xff]  ;;  %v413_v17 = vld [vmem:[#allocation2 + $0x40] sm:$0xff]  ;;  %v601_v8 = vlaneseq  ;;  %s1045_s8 = sshll.u32 %s1117_s29, 4  ;;  %s1046_s8 = int_to_ptr.vmem [resolvable:$false] %s1045_s8 }
  0x54   : > { %s720_s18 = sshll.u32 %s1380_s16, 3  ;;  %852 = vmatpush3.bf16.msra.mxu0 %v849_v3  ;;  %854 = vmatprep.subr.bf16.mxu1 %v853_v6  ;;  %v865_v16 = vpack.c.bf16 %v412_v15, %v411_v14  ;;  %v414_v18 = vld [vmem:[#allocation2 + $0x48] sm:$0xff]  ;;  %v415_v20 = vld [vmem:[#allocation2 + $0x50] sm:$0xff]  ;;  %v416_v21 = vld [vmem:[#allocation2 + $0x58] sm:$0xff]  ;;  %s300_s16 = sand.u32 1, %s1103_s25  }
  0x55   : > { %s307_s17 = scalar_lea.vmem %s1351_s0, %s720_s18  ;;  %856 = vmatpush3.bf16.msra.mxu1 %v853_v6  ;;  %v869_v19 = vpack.c.bf16 %v414_v18, %v413_v17  ;;  %v873_v22 = vpack.c.bf16 %v416_v21, %v415_v20  ;;  %v417_v23 = vld [vmem:[#allocation2 + $0x60] sm:$0xff]  ;;  %v418_v24 = vld [vmem:[#allocation2 + $0x68] sm:$0xff]  ;;  %v419_v26 = vld [vmem:[#allocation2 + $0x70] sm:$0xff]  ;;  %s718_s18 = sshll.u32 %s300_s16, 4 }
  0x56   : > { %v310_v2 = vld [vmem:[%s307_s17] sm:$0xff]  ;;  %v311_v12 = vld [vmem:[%s307_s17 + $0x8] sm:$0xff]  ;;  %858 = vmatprep.subr.bf16.mxu1 %v857_v9  ;;  %v877_v25 = vpack.c.bf16 %v418_v24, %v417_v23  ;;  %v420_v27 = vld [vmem:[#allocation2 + $0x78] sm:$0xff]  ;;  %s302_s13 = scalar_lea.vmem [#allocation7], %s718_s18  ;;  %s731_s17 = sshll.u32 %s1181_s28, 8 }
  0x57   : > { %776 = vmatprep.mubr.msk.f32.mxu0 %vm321_vm0, %v310_v2  ;;  %v881_v28 = vpack.c.bf16 %v420_v27, %v419_v26  ;;  %v503_v29 = vld [vmem:[#allocation5] sm:$0xff]  ;;  %v504_v30 = vld [vmem:[#allocation5 + $0x8] sm:$0xff]  ;;  %v505_v31 = vld [vmem:[#allocation5 + $0x10] sm:$0xff]  ;;  %s626_s14 = sshll.u32 %s302_s13, 4  ;;  %s1308_s22 = scalar_lea.hbm %s1358_s7, %s731_s17  ;;  %s1303_s14 = int_to_ptr.vmem [resolvable:$true] %s626_s14 }
  0x58   : > { %777 = vmatmul.mubr.msk.f32.vlgmr.msra.gmra.mrb[0].mxu0 %vm321_vm0, %v311_v12  ;;  %v885_v32 = vpack.c.bf16 %v504_v30, %v503_v29  ;;  %v506_v33 = vld [vmem:[#allocation5 + $0x18] sm:$0xff]  ;;  %v507_v35 = vld [vmem:[#allocation5 + $0x20] sm:$0xff]  ;;  %v508_v36 = vld [vmem:[#allocation5 + $0x28] sm:$0xff]  ;;  %s1310_s23 = scalar_lea.sflag [#allocation4], %s300_s16  ;;  %s1041_s28 = scalar_lea.vmem %s1303_s14, 256 }
  0x59   : > { %860 = vmatpush3.bf16.msra.mxu1 %v857_v9  ;;  %v889_v34 = vpack.c.bf16 %v506_v33, %v505_v31  ;;  %v893_v37 = vpack.c.bf16 %v508_v36, %v507_v35  ;;  %v509_v38 = vld [vmem:[#allocation5 + $0x30] sm:$0xff]  ;;  %v510_v39 = vld [vmem:[#allocation5 + $0x38] sm:$0xff]  ;;  %v511_v41 = vld [vmem:[#allocation5 + $0x40] sm:$0xff]  ;;  %v602_v9 = vand.u32 127, %v601_v8  ;;  %p1042_p12 = scmp.ne.s32.totalorder %s1303_s14, %s1041_s28  ;;  %s1047_s9 = scalar_lea.vmem %s1046_s8, 512 }
  0x5a   : > { %862 = vmatprep.subr.bf16.mxu1 %v861_v13  ;;  %886 = vmatprep.subr.bf16.mxu0 %v885_v32  ;;  %v897_v40 = vpack.c.bf16 %v510_v39, %v509_v38  ;;  %v512_v42 = vld [vmem:[#allocation5 + $0x48] sm:$0xff]  ;;  %v513_v44 = vld [vmem:[#allocation5 + $0x50] sm:$0xff]  ;;  %v514_v45 = vld [vmem:[#allocation5 + $0x58] sm:$0xff]  ;;  %p1048_p4 = scmp.lt.s32.totalorder %s1303_s14, %s1046_s8  ;;  %p1049_p7 = scmp.lt.s32.totalorder %s1047_s9, %s1041_s28 }
  0x5b   : > { %888 = vmatpush3.bf16.msra.mxu0 %v885_v32  ;;  %v901_v43 = vpack.c.bf16 %v512_v42, %v511_v41  ;;  %v905_v46 = vpack.c.bf16 %v514_v45, %v513_v44  ;;  %v515_v47 = vld [vmem:[#allocation5 + $0x60] sm:$0xff]  ;;  %v516_v48 = vld [vmem:[#allocation5 + $0x68] sm:$0xff]  ;;  %v517_v57 = vld [vmem:[#allocation5 + $0x70] sm:$0xff]  ;;  %vm603_vm1 = vcmp.lt.s32.totalorder %v602_v9, 8  ;;  %p1043_p2 = pnand %p1042_p12, %p1372_p1 }
  0x5c   : > { %890 = vmatprep.subr.bf16.mxu0 %v889_v34  ;;  %v909_v49 = vpack.c.bf16 %v516_v48, %v515_v47  ;;  %v721_v50 = vld [vmem:[%s1353_s2] ss:$0 sm:$0xff]  ;;  %v518_v58 = vld [vmem:[#allocation5 + $0x78] sm:$0xff]  ;;  %p1050_p8 = por %p1049_p7, %p1048_p4 }
  0x5d   : > { %864 = vmatpush3.bf16.msra.mxu1 %v861_v13  ;;  %v913_v59 = vpack.c.bf16 %v518_v58, %v517_v57  ;;  %v724_v60 = vld [vmem:[%s1355_s4] ss:$0 sm:$0xff]  ;;  %p1044_p3 = pneg %p1043_p2 }
  0x5e   : > { %866 = vmatprep.subr.bf16.mxu1 %v865_v16  ;;  %v725_v1 = vld [vmem:[%s1357_s6] ss:$0 sm:$0xff] }
  0x5f   : > { %892 = vmatpush3.bf16.msra.mxu0 %v889_v34  ;;  %p1051_p11 = pnand %p1050_p8, %p1044_p3 }
  0x60   : > { %894 = vmatprep.subr.bf16.mxu0 %v893_v37 }
  0x61   : > { %868 = vmatpush3.bf16.msra.mxu1 %v865_v16 }
  0x62   : > { %870 = vmatprep.subr.bf16.mxu1 %v869_v19 }
  0x63   : > { %896 = vmatpush3.bf16.msra.mxu0 %v893_v37 }
  0x64   : > { %898 = vmatprep.subr.bf16.mxu0 %v897_v40 }
  0x65   : > { %872 = vmatpush3.bf16.msra.mxu1 %v869_v19 }
  0x66   : > { %874 = vmatprep.subr.bf16.mxu1 %v873_v22 }
  0x67   : > { %900 = vmatpush3.bf16.msra.mxu0 %v897_v40 }
  0x68   : > { %902 = vmatprep.subr.bf16.mxu0 %v901_v43 }
  0x69   : > { %876 = vmatpush3.bf16.msra.mxu1 %v873_v22 }
  0x6a   : > { %878 = vmatprep.subr.bf16.mxu1 %v877_v25 }
  0x6b   : > { %904 = vmatpush3.bf16.msra.mxu0 %v901_v43 }
  0x6c   : > { %906 = vmatprep.subr.bf16.mxu0 %v905_v46 }
  0x6d   : > { %880 = vmatpush3.bf16.msra.mxu1 %v877_v25 }
  0x6e   : > { %882 = vmatprep.subr.bf16.mxu1 %v881_v28 }
  0x6f   : > { %908 = vmatpush3.bf16.msra.mxu0 %v905_v46 }
  0x70   : > { %910 = vmatprep.subr.bf16.mxu0 %v909_v49 }
  0x71   : > { %884 = vmatpush3.bf16.msra.mxu1 %v881_v28 }
  0x73   : > { %912 = vmatpush3.bf16.msra.mxu0 %v909_v49 }
  0x74   : > { %914 = vmatprep.subr.bf16.mxu0 %v913_v59 }
  0x77   : > { %916 = vmatpush3.bf16.msra.mxu0 %v913_v59 }
 0x12b   : > { %v778_v51 = vpop.f32.mrb[0].mxu0 }
 0x12c   : > { %v400_v52 = vadd.f32 %v778_v51, %v721_v50  ;;  %v394_v53 = vpop.f32.mrb[1].mxu0 }
 0x12d   : > { %v395_v54 = vadd.f32 %v721_v50, %v394_v53 }
 0x12e   : > { %v404_v56 = vmax.f32 %v400_v52, 0.0 }
 0x12f   : > { %v403_v55 = vmax.f32 %v395_v54, 0.0 }
 0x131   : > { %811 = vmatprep.mubr.f32.mxu1 %v403_v55 }
 0x132   : > { %812 = vmatmul.mubr.f32.vlgmr.msra.gmra.mrb[0].mxu1 %v404_v56 }
 0x205   : > { %v813_v61 = vpop.f32.mrb[0].mxu1 }
 0x206   : > { %v494_v62 = vpop.f32.mrb[1].mxu1  ;;  %v500_v0 = vadd.f32 %v813_v61, %v724_v60 }
 0x207   : > { %v495_v63 = vadd.f32 %v724_v60, %v494_v62 }
 0x209   : > { %846 = vmatprep.mubr.f32.mxu0 %v495_v63 }
 0x20a   : > { %847 = vmatmul.mubr.f32.vlgmr.msra.gmra.mrb[2].mxu0 %v500_v0 }
 0x2dd   : > { %v848_v2 = vpop.f32.mrb[2].mxu0 }
 0x2de   : > { %v598_v3 = vadd.f32 %v848_v2, %v725_v1  ;;  %v592_v4 = vpop.f32.mrb[3].mxu0 }
 0x2df   : > { %v593_v5 = vadd.f32 %v725_v1, %v592_v4 }
 0x2e0   : > { %v606_v6 = vmul.f32 1.442695, %v598_v3 }
 0x2e1   : > { %v604_v7 = vmul.f32 1.442695, %v593_v5 }
 0x2e2   : > { %981 = vpow2.f32 %v606_v6 }
 0x2e3   : > { %983 = vpow2.f32 %v604_v7 }
 0x2ec   : > { %v982_v10 = vpop.eup %981 }
 0x2ed   : > { %v984_v11 = vpop.eup %983  ;;  %v609_v12 = vsel %vm603_vm1, %v598_v3, %v982_v10 }
 0x2ee   : > { %611 = vst [vmem:[%s302_s13 + $0x8] sm:$0xff] %v609_v12  ;;  %v608_v13 = vsel %vm603_vm1, %v593_v5, %v984_v11 }
 0x2ef   : > { %610 = vst [vmem:[%s302_s13] sm:$0xff] %v608_v13 }
 0x2f0   : > { %1054 = shalt.err (!%p1051_p11)
}
 0x2f1   : > { %s1055_s15 = scalar_lea.hbm %s1308_s22, 256  ;;  %s1059_s16 = scalar_lea.hbm %s1358_s7, 512 }
 0x2f2   : > { %p1056_p13 = scmp.ne.s32.totalorder %s1308_s22, %s1055_s15  ;;  %p1060_p6 = scmp.lt.u32.totalorder %s1308_s22, %s1358_s7 }
 0x2f3   : > { %p1061_p9 = scmp.lt.u32.totalorder %s1059_s16, %s1055_s15  ;;  %p1063_p12 = scmp.lt.u32.totalorder %s1055_s15, %s1308_s22 }
 0x2f4   : > { %p1057_p5 = pnand %p1056_p13, %p1372_p1 }
 0x2f5   : > { %p1062_p10 = por %p1061_p9, %p1060_p6 }
 0x2f6   : > { %p1058_p0 = pneg %p1057_p5 }
 0x2f7   : > { %p1064_p2 = por %p1063_p12, %p1062_p10 }
 0x2f9   : > { %p1065_p3 = pnand %p1064_p2, %p1058_p0 }
 0x2fb   : > { %1068 = shalt.err (!%p1065_p3)
}
 0x2fc   : > { %s1118_s17 = smov 128   ;;  %s1119_s20 = smov 8  }
 0x2fd   : > { %925 = dma.vmem_to_hbm [thread:$0]  (%p1372_p1), %s1303_s14, 256, %s1308_s22, %s1310_s23, %s1118_s17, %s1118_s17, %s1119_s20  }
 0x2fe PF: > { %p942_p4 = scmp.ge.s32.totalorder %s1111_s27, 2  ;;  %s641_s21 = sand.u32 1, %s1099_s24  }
 0x2ff   : > { %p1373_p7 = scmp.ne.s32.totalorder %s1364_s12, 0  ;;  %s642_s28 = scalar_lea.sflag [#allocation4], %s641_s21 }
 0x301   : > { %p935_p8 = pnand %p942_p4, %p1373_p7 }
 0x303   : > { %1094 = dma.done.wait (!%p935_p8), %s642_s28, 256  }
 0x304   : > { %1096 = vsyncadd (!%p935_p8), %s642_s28, 4294967040  ;;  %s1374_s29 = sld [smem:[#allocation11_spill]]  ;;  %p19_p11 = scmp.ge.s32.totalorder %s1185_s30, 4  }
 0x305   : > { %s1375_s24 = smov %s1103_s25  ;;  %s1376_s25 = smov %s1107_s26 }
 0x306   : > { %s1378_s27 = smov %s1185_s30  ;;  %21 = sbr.rel (!%p19_p11) target bundleno = 5 (0x5), region = 92 }
 0x30a   : > { %s1377_s26 = smov %s1374_s29 }
 0x30d   :  { %647 = vsyncpa [#allocation3], 1 }
 0x30e   :  { %649 = vsyncpa [#allocation3 + $0x1], 1 }
 0x30f   :  { %650 = vsyncpa [#allocation6], 1 }
 0x310   :  { %651 = vsyncpa [#allocation4], 1 }
 0x311   :  { %653 = vsyncpa [#allocation4 + $0x1], 1 }

</bundles_post_ra>
